<compile_context>
chip_gen: v7x
topology: tpu7x:2x2x1
jax: 0.10.0
libtpu: 0.0.40
codegen_flags: <defaults>
</compile_context>

<pallas_src>
import functools

import jax
import jax.numpy as jnp
import numpy as np
from jax.experimental import pallas as pl
from jax.experimental.pallas import tpu as pltpu

_LANE = 128
_SELECT_MAX_B = 16          # <= this many graphs: VPU select gather in pass 2
_NUM_STAT_SPLITS = 2        # leading "parallel" axis for pass 1 (v7x: 2 TCs)


def _round_up(x, m):
    return ((x + m - 1) // m) * m


def _cdiv(a, b):
    return (a + b - 1) // b


def _one_hot_f32(ids, num_classes):
    """ids: [R, 1] int32 -> [R, num_classes] f32 {0,1} via iota compare."""
    cols = jax.lax.broadcasted_iota(jnp.int32, (ids.shape[0], num_classes), 1)
    return (ids == cols).astype(jnp.float32)


def _gather_rows(ids, table, num_classes):
    """Per-row gather of `table` ([B, W]) by graph id ([R, 1]) -> [R, W]."""
    if num_classes <= _SELECT_MAX_B:
        out = jnp.zeros((ids.shape[0], table.shape[1]), jnp.float32)
        for k in range(num_classes):               # static unroll, VPU only
            out = jnp.where(ids == k, table[k:k + 1, :], out)
        return out
    oh = _one_hot_f32(ids, num_classes)            # [R, B]
    return jnp.dot(oh, table, preferred_element_type=jnp.float32)


def _stats_kernel(x_ref, ids_ref, out_ref, *, batch_size):
    """Pass 1: accumulate per-(graph, channel) [sum | sum_sq] partials.

    Grid = (num_splits "parallel", tiles_per_split "arbitrary"); each split
    owns one [B, 2C] output block that stays VMEM-resident across its tiles.
    """
    t = pl.program_id(1)

    @pl.when(t == 0)
    def _init():
        out_ref[...] = jnp.zeros_like(out_ref)

    x = x_ref[...].astype(jnp.float32)                      # [TN, C]
    xx = jnp.concatenate([x, x * x], axis=1)                # [TN, 2C]
    oh = _one_hot_f32(ids_ref[...], batch_size)             # [TN, B]
    # Single transposed contraction on the MXU:
    #   out[b, :] += sum_n oh[n, b] * [x | x*x][n, :]
    dn = (((0,), (0,)), ((), ()))
    out_ref[...] += jax.lax.dot_general(
        oh, xx, dn, preferred_element_type=jnp.float32)


def _normalize_kernel(x_ref, ids_ref, table_ref, o_ref, *, batch_size, c):
    """Pass 2: out = x * scale[batch] + shift[batch], fused per row tile."""
    x = x_ref[...].astype(jnp.float32)                      # [TN, C]
    ss = _gather_rows(ids_ref[...], table_ref[...], batch_size)   # [TN, 2C]
    o_ref[...] = (x * ss[:, :c] + ss[:, c:]).astype(o_ref.dtype)


def _fused_kernel(x_ref, ids_ref, inv_norm_ref, gh_ref, ghT_ref, w_ref, b_ref,
                  o_ref, *, batch_size, c, eps):
    """Single-pass variant: whole padded x resident in VMEM (1 read + 1 write)."""
    x = x_ref[...].astype(jnp.float32)                      # [N, C]
    ids = ids_ref[...]                                      # [N, 1]
    xx = jnp.concatenate([x, x * x], axis=1)                # [N, 2C]
    oh = _one_hot_f32(ids, batch_size)                      # [N, B]
    dn = (((0,), (0,)), ((), ()))
    acc = jax.lax.dot_general(oh, xx, dn,
                              preferred_element_type=jnp.float32)   # [B, 2C]

    inv_norm = inv_norm_ref[...]                            # [B, 1]
    gh, ghT = gh_ref[...], ghT_ref[...]                     # [C, G], [G, C]
    mean_g = jnp.dot(acc[:, :c], gh,
                     preferred_element_type=jnp.float32) * inv_norm  # [B, G]
    ex2_g = jnp.dot(acc[:, c:], gh,
                    preferred_element_type=jnp.float32) * inv_norm   # [B, G]
    var_g = jnp.maximum(ex2_g - mean_g * mean_g, 0.0)
    inv_std_g = jax.lax.rsqrt(var_g + eps)                  # [B, G]
    mean_c = jnp.dot(mean_g, ghT, preferred_element_type=jnp.float32)     # [B, C]
    inv_std_c = jnp.dot(inv_std_g, ghT, preferred_element_type=jnp.float32)
    scale = w_ref[...] * inv_std_c                          # [B, C]
    shift = b_ref[...] - mean_c * scale                     # [B, C]
    table = jnp.concatenate([scale, shift], axis=1)         # [B, 2C]

    ss = _gather_rows(ids, table, batch_size)               # [N, 2C]
    o_ref[...] = (x * ss[:, :c] + ss[:, c:]).astype(o_ref.dtype)


def group_norm_graph(x, batch, weight, bias, *, num_groups, batch_size,
                     eps=1e-5, tile_n=None, single_pass=None):
    """GroupNorm, mode='graph'. x: [N, C]; batch: [N] int32 in [0, batch_size)."""
    n, c = x.shape
    assert c % num_groups == 0
    gc = c // num_groups

    if batch is None:
        batch = jnp.zeros((n,), dtype=jnp.int32)
        batch_size = 1
    batch = batch.astype(jnp.int32)
    if weight is None:
        weight = jnp.ones((c,), dtype=jnp.float32)
    if bias is None:
        bias = jnp.zeros((c,), dtype=jnp.float32)
    weight = weight.astype(jnp.float32)
    bias = bias.astype(jnp.float32)

    x_bytes = x.dtype.itemsize
    c_pad = _round_up(c, _LANE)                 # lane-padded widths for VMEM math
    c2_pad = _round_up(2 * c, _LANE)
    b_pad = _round_up(batch_size, _LANE)

    # Per-graph inverse normalizer 1 / (clamp(count, 1) * gc) -- tiny [B] op.
    counts = jnp.zeros((batch_size,), jnp.float32).at[batch].add(1.0)
    inv_norm = 1.0 / (jnp.maximum(counts, 1.0) * gc)              # [B]

    # ------------------------------------------------------------------
    # Fused single-pass path: whole padded x resident in VMEM.
    # ------------------------------------------------------------------
    n8 = _round_up(n, 8)
    fused_vmem = n8 * (2 * c_pad * x_bytes          # x-in + out blocks
                       + _LANE * 4                  # ids column (lane padded)
                       + 3 * c2_pad * 4             # xx / gathered (scale|shift)
                       + b_pad * 4)                 # one-hot
    if single_pass is None:
        single_pass = fused_vmem <= (6 << 20)       # safe under v5e's 16 MiB

    if single_pass:
        if n8 != n:
            x_p = jnp.pad(x, ((0, n8 - n), (0, 0)))
            batch_p = jnp.pad(batch, (0, n8 - n), constant_values=batch_size)
        else:
            x_p, batch_p = x, batch
        ids_p = batch_p.reshape(n8, 1)
        group_ids = jnp.arange(c, dtype=jnp.int32) // gc
        gh = jax.nn.one_hot(group_ids, num_groups, dtype=jnp.float32)  # [C, G]
        ghT = gh.T                                                     # [G, C]

        def full(shape):
            return pl.BlockSpec(shape, lambda i: (0,) * len(shape))

        out_p = pl.pallas_call(
            functools.partial(_fused_kernel, batch_size=batch_size, c=c,
                              eps=float(eps)),
            out_shape=jax.ShapeDtypeStruct((n8, c), x.dtype),
            grid=(1,),
            in_specs=[
                full((n8, c)),                 # x
                full((n8, 1)),                 # batch ids
                full((batch_size, 1)),         # inv_norm
                full((c, num_groups)),         # gh
                full((num_groups, c)),         # ghT
                full((1, c)),                  # weight
                full((1, c)),                  # bias
            ],
            out_specs=full((n8, c)),
            compiler_params=pltpu.CompilerParams(
                dimension_semantics=("arbitrary",)),
        )(x_p, ids_p, inv_norm.reshape(batch_size, 1), gh, ghT,
          weight.reshape(1, c), bias.reshape(1, c))
        return out_p[:n]

    # ------------------------------------------------------------------
    # Two-pass pipelined path.
    # ------------------------------------------------------------------
    if tile_n is None:
        # Lane-padded per-row VMEM cost: double-buffered x-in/out/ids streams
        # plus in-kernel f32 temporaries.  12 MiB budget keeps headroom under
        # the smallest scoped-VMEM default (v5e: 16 MiB; v6e/v7x: 32 MiB).
        stream_row = 2 * (2 * c_pad * x_bytes + _LANE * 4)
        temp_row = 4 * c2_pad * 4 + 2 * b_pad * 4
        tile_n = (12 << 20) // max(stream_row + temp_row, 1)
        tile_n = max(64, min(4096, tile_n))
    tile_n = max(8, min((tile_n // 8) * 8, _round_up(n, 8)))

    num_tiles = _cdiv(n, tile_n)
    num_splits = _NUM_STAT_SPLITS if num_tiles >= 2 else 1
    tiles_per_split = _cdiv(num_tiles, num_splits)
    total_tiles = num_splits * tiles_per_split
    n_pad = total_tiles * tile_n

    # Padded rows get graph id == batch_size: all-false one-hot / selects, so
    # they contribute nothing to the statistics and produce zeros (sliced off).
    if n_pad != n:
        x_p = jnp.pad(x, ((0, n_pad - n), (0, 0)))
        batch_p = jnp.pad(batch, (0, n_pad - n), constant_values=batch_size)
    else:
        x_p, batch_p = x, batch
    ids_p = batch_p.reshape(n_pad, 1)

    def row_tile_1(width):
        return pl.BlockSpec((tile_n, width),
                            lambda s, t: (s * tiles_per_split + t, 0))

    # ---- pass 1: per-split partial [B, 2C] = [sum | sum_sq] ----
    partials = pl.pallas_call(
        functools.partial(_stats_kernel, batch_size=batch_size),
        out_shape=jax.ShapeDtypeStruct((num_splits, batch_size, 2 * c),
                                       jnp.float32),
        grid=(num_splits, tiles_per_split),
        in_specs=[row_tile_1(c), row_tile_1(1)],
        out_specs=pl.BlockSpec((None, batch_size, 2 * c),
                               lambda s, t: (s, 0, 0)),
        compiler_params=pltpu.CompilerParams(
            dimension_semantics=("parallel", "arbitrary")),
    )(x_p, ids_p)

    # ---- tiny [B, C] finalize in plain JAX (folds the 2-core partials) ----
    sums = jnp.sum(partials, axis=0)                         # [B, 2C]
    s1, s2 = sums[:, :c], sums[:, c:]
    mean_g = s1.reshape(batch_size, num_groups, gc).sum(-1) * inv_norm[:, None]
    ex2_g = s2.reshape(batch_size, num_groups, gc).sum(-1) * inv_norm[:, None]
    var_g = jnp.maximum(ex2_g - mean_g * mean_g, 0.0)
    inv_std_g = jax.lax.rsqrt(var_g + eps)
    mean_c = jnp.repeat(mean_g, gc, axis=1)                  # [B, C]
    inv_std_c = jnp.repeat(inv_std_g, gc, axis=1)            # [B, C]
    scale = weight[None, :] * inv_std_c
    shift = bias[None, :] - mean_c * scale
    table = jnp.concatenate([scale, shift], axis=1)          # [B, 2C]

    # ---- pass 2: fused normalize + affine, independent per row tile ----
    def row_tile_2(width):
        return pl.BlockSpec((tile_n, width), lambda i: (i, 0))

    out_p = pl.pallas_call(
        functools.partial(_normalize_kernel, batch_size=batch_size, c=c),
        out_shape=jax.ShapeDtypeStruct((n_pad, c), x.dtype),
        grid=(total_tiles,),
        in_specs=[
            row_tile_2(c),                                   # x
            row_tile_2(1),                                   # batch ids
            pl.BlockSpec((batch_size, 2 * c), lambda i: (0, 0)),   # table
        ],
        out_specs=row_tile_2(c),
        compiler_params=pltpu.CompilerParams(
            dimension_semantics=("parallel",)),
    )(x_p, ids_p, table)

    return out_p[:n]


def _reference_group_norm_graph(x, batch, weight, bias, *, num_groups,
                                batch_size, eps=1e-5):
    """Pure-JAX reference mirroring the PyTorch forward (mode='graph')."""
    n, c = x.shape
    gc = c // num_groups
    if batch is None:
        batch = jnp.zeros((n,), jnp.int32)
        batch_size = 1
    xg = x.reshape(n, num_groups, gc)
    deg = jnp.zeros((batch_size,), x.dtype).at[batch].add(1.0)
    norm = (jnp.maximum(deg, 1.0) * gc).reshape(-1, 1, 1)
    seg_sum = jnp.zeros((batch_size, num_groups, gc), x.dtype).at[batch].add(xg)
    mean = seg_sum.sum(-1, keepdims=True) / norm
    xc = xg - mean[batch]
    seg_sq = jnp.zeros((batch_size, num_groups, gc), x.dtype).at[batch].add(xc * xc)
    var = seg_sq.sum(-1, keepdims=True) / norm
    out = xc / jnp.sqrt(var + eps)[batch]
    out = out.reshape(n, c)
    return out * weight + bias


if __name__ == "__main__":
    key = jax.random.PRNGKey(0)
    k1, k2, k3, k4, k5, k6 = jax.random.split(key, 6)
    eps = 1e-5

    # --- Test 1: module-default shapes; fused single-pass path ---
    C1, G1, N1 = 8, 4, 16
    x1 = jax.random.normal(k1, (N1, C1), dtype=jnp.float32)
    batch1 = jnp.array([0] * 6 + [1] * 5 + [2] * 5, dtype=jnp.int32)   # 3 graphs
    w1 = jnp.ones((C1,), jnp.float32)      # reset_parameters()
    b1 = jnp.zeros((C1,), jnp.float32)
    out1 = jax.block_until_ready(
        group_norm_graph(x1, batch1, w1, b1, num_groups=G1, batch_size=3,
                         eps=eps))
    ref1 = _reference_group_norm_graph(x1, batch1, w1, b1, num_groups=G1,
                                       batch_size=3, eps=eps)
    np.testing.assert_allclose(np.asarray(out1), np.asarray(ref1),
                               rtol=1e-4, atol=1e-5)

    # --- Test 2: two-pass path (multi-tile accumulation, 2-way stats split,
    #     row padding, VPU-select gather with B <= 16) ---
    C2, G2, N2 = 16, 4, 40
    x2 = jax.random.normal(k2, (N2, C2), dtype=jnp.float32)
    batch2 = jnp.array([0] * 12 + [1] * 9 + [2] * 11 + [3] * 8, dtype=jnp.int32)
    w2 = jax.random.normal(k3, (C2,), jnp.float32) + 1.0
    b2 = jax.random.normal(k4, (C2,), jnp.float32)
    out2 = jax.block_until_ready(
        group_norm_graph(x2, batch2, w2, b2, num_groups=G2, batch_size=4,
                         eps=eps, tile_n=16, single_pass=False))
    ref2 = _reference_group_norm_graph(x2, batch2, w2, b2, num_groups=G2,
                                       batch_size=4, eps=eps)
    np.testing.assert_allclose(np.asarray(out2), np.asarray(ref2),
                               rtol=1e-4, atol=1e-5)

    # --- Test 3: two-pass path with batch_size > 16 (fused one-hot MXU gather) ---
    C3, G3, N3, B3 = 32, 8, 50, 20
    x3 = jax.random.normal(k5, (N3, C3), dtype=jnp.float32)
    sizes = [3] * 10 + [2] * 10      # 50 nodes across 20 graphs
    batch3 = jnp.asarray(np.repeat(np.arange(B3), sizes), dtype=jnp.int32)
    w3 = jax.random.normal(k6, (C3,), jnp.float32) + 1.0
    b3 = jnp.zeros((C3,), jnp.float32)
    out3 = jax.block_until_ready(
        group_norm_graph(x3, batch3, w3, b3, num_groups=G3, batch_size=B3,
                         eps=eps, tile_n=16, single_pass=False))
    ref3 = _reference_group_norm_graph(x3, batch3, w3, b3, num_groups=G3,
                                       batch_size=B3, eps=eps)
    np.testing.assert_allclose(np.asarray(out3), np.asarray(ref3),
                               rtol=1e-4, atol=1e-5)

    # --- Test 4: batch=None default (single graph, module default path) ---
    x4 = jax.random.normal(k1, (24, 8), dtype=jnp.float32)
    out4 = jax.block_until_ready(
        group_norm_graph(x4, None, None, None, num_groups=4, batch_size=None,
                         eps=eps))
    ref4 = _reference_group_norm_graph(x4, None, jnp.ones((8,), jnp.float32),
                                       jnp.zeros((8,), jnp.float32),
                                       num_groups=4, batch_size=1, eps=eps)
    np.testing.assert_allclose(np.asarray(out4), np.asarray(ref4),
                               rtol=1e-4, atol=1e-5)

    print("KERNEL_OK")
</pallas_src>

<mosaic_0001>
module attributes {stable_mosaic.version = 11 : i64} {
  func.func @_fused_kernel(%arg0: i32, %arg1: memref<16x8xf32, #tpu.memory_space<vmem>>, %arg2: memref<16x1xi32, #tpu.memory_space<vmem>>, %arg3: memref<3x1xf32, #tpu.memory_space<vmem>>, %arg4: memref<8x4xf32, #tpu.memory_space<vmem>>, %arg5: memref<4x8xf32, #tpu.memory_space<vmem>>, %arg6: memref<1x8xf32, #tpu.memory_space<vmem>>, %arg7: memref<1x8xf32, #tpu.memory_space<vmem>>, %arg8: memref<16x8xf32, #tpu.memory_space<vmem>>) attributes {dimension_semantics = [#tpu.dimension_semantics<arbitrary>], iteration_bounds = array<i64: 1>, scalar_prefetch = 0 : i64, scratch_operands = 0 : i64, tpu.core_type = #tpu.core_type<tc>, window_params = [{pipeline_mode = #tpu.pipeline_mode<synchronous>, transform_indices = @transform_0, window_bounds = array<i64: 16, 8>}, {pipeline_mode = #tpu.pipeline_mode<synchronous>, transform_indices = @transform_1, window_bounds = array<i64: 16, 1>}, {pipeline_mode = #tpu.pipeline_mode<synchronous>, transform_indices = @transform_2, window_bounds = array<i64: 3, 1>}, {pipeline_mode = #tpu.pipeline_mode<synchronous>, transform_indices = @transform_3, window_bounds = array<i64: 8, 4>}, {pipeline_mode = #tpu.pipeline_mode<synchronous>, transform_indices = @transform_4, window_bounds = array<i64: 4, 8>}, {pipeline_mode = #tpu.pipeline_mode<synchronous>, transform_indices = @transform_5, window_bounds = array<i64: 1, 8>}, {pipeline_mode = #tpu.pipeline_mode<synchronous>, transform_indices = @transform_6, window_bounds = array<i64: 1, 8>}, {pipeline_mode = #tpu.pipeline_mode<synchronous>, transform_indices = @transform_7, window_bounds = array<i64: 16, 8>}]} {
    %c0 = arith.constant 0 : index
    %c0_0 = arith.constant 0 : index
    %0 = vector.load %arg1[%c0, %c0_0] : memref<16x8xf32, #tpu.memory_space<vmem>>, vector<16x8xf32>
    %c0_1 = arith.constant 0 : index
    %c0_2 = arith.constant 0 : index
    %1 = vector.load %arg2[%c0_1, %c0_2] : memref<16x1xi32, #tpu.memory_space<vmem>>, vector<16x1xi32>
    %2 = arith.mulf %0, %0 : vector<16x8xf32>
    %3 = tpu.concatenate %0, %2 in 1 : vector<16x8xf32>, vector<16x8xf32> -> vector<16x16xf32>
    %4 = tpu.iota {dimensions = array<i32: 1>} : vector<16x3xi32>
    %5 = vector.broadcast %1 : vector<16x1xi32> to vector<16x3xi32>
    %6 = arith.cmpi eq, %5, %4 : vector<16x3xi32>
    %7 = arith.extui %6 : vector<16x3xi1> to vector<16x3xi32>
    %8 = arith.sitofp %7 : vector<16x3xi32> to vector<16x3xf32>
    %cst = arith.constant dense<0.000000e+00> : vector<3x16xf32>
    %9 = tpu.matmul %8, %3, %cst {dimension_numbers = #tpu.dot_dimension_numbers<[0], [0], [1], [1], [0, 1, 1, 1], [], []>} : vector<16x3xf32>, vector<16x16xf32>, vector<3x16xf32> -> vector<3x16xf32>
    %c0_3 = arith.constant 0 : index
    %c0_4 = arith.constant 0 : index
    %10 = vector.load %arg3[%c0_3, %c0_4] : memref<3x1xf32, #tpu.memory_space<vmem>>, vector<3x1xf32>
    %c0_5 = arith.constant 0 : index
    %c0_6 = arith.constant 0 : index
    %11 = vector.load %arg4[%c0_5, %c0_6] : memref<8x4xf32, #tpu.memory_space<vmem>>, vector<8x4xf32>
    %c0_7 = arith.constant 0 : index
    %c0_8 = arith.constant 0 : index
    %12 = vector.load %arg5[%c0_7, %c0_8] : memref<4x8xf32, #tpu.memory_space<vmem>>, vector<4x8xf32>
    %13 = vector.extract_strided_slice %9 {offsets = [0, 0], sizes = [3, 8], strides = [1, 1]} : vector<3x16xf32> to vector<3x8xf32>
    %cst_9 = arith.constant dense<0.000000e+00> : vector<3x4xf32>
    %14 = tpu.matmul %13, %11, %cst_9 {dimension_numbers = #tpu.dot_dimension_numbers<[1], [0], [0], [1], [0, 0, 1, 1], [], []>} : vector<3x8xf32>, vector<8x4xf32>, vector<3x4xf32> -> vector<3x4xf32>
    %15 = vector.broadcast %10 : vector<3x1xf32> to vector<3x4xf32>
    %16 = arith.mulf %14, %15 : vector<3x4xf32>
    %17 = vector.extract_strided_slice %9 {offsets = [0, 8], sizes = [3, 8], strides = [1, 1]} : vector<3x16xf32> to vector<3x8xf32>
    %cst_10 = arith.constant dense<0.000000e+00> : vector<3x4xf32>
    %18 = tpu.matmul %17, %11, %cst_10 {dimension_numbers = #tpu.dot_dimension_numbers<[1], [0], [0], [1], [0, 0, 1, 1], [], []>} : vector<3x8xf32>, vector<8x4xf32>, vector<3x4xf32> -> vector<3x4xf32>
    %19 = vector.broadcast %10 : vector<3x1xf32> to vector<3x4xf32>
    %20 = arith.mulf %18, %19 : vector<3x4xf32>
    %21 = arith.mulf %16, %16 : vector<3x4xf32>
    %22 = arith.subf %20, %21 : vector<3x4xf32>
    %cst_11 = arith.constant 0.000000e+00 : f32
    %23 = vector.broadcast %cst_11 : f32 to vector<3x4xf32>
    %24 = arith.maximumf %22, %23 : vector<3x4xf32>
    %cst_12 = arith.constant 9.99999974E-6 : f32
    %25 = vector.broadcast %cst_12 : f32 to vector<3x4xf32>
    %26 = arith.addf %24, %25 : vector<3x4xf32>
    %27 = math.rsqrt %26 : vector<3x4xf32>
    %cst_13 = arith.constant dense<0.000000e+00> : vector<3x8xf32>
    %28 = tpu.matmul %16, %12, %cst_13 {dimension_numbers = #tpu.dot_dimension_numbers<[1], [0], [0], [1], [0, 0, 1, 1], [], []>} : vector<3x4xf32>, vector<4x8xf32>, vector<3x8xf32> -> vector<3x8xf32>
    %cst_14 = arith.constant dense<0.000000e+00> : vector<3x8xf32>
    %29 = tpu.matmul %27, %12, %cst_14 {dimension_numbers = #tpu.dot_dimension_numbers<[1], [0], [0], [1], [0, 0, 1, 1], [], []>} : vector<3x4xf32>, vector<4x8xf32>, vector<3x8xf32> -> vector<3x8xf32>
    %c0_15 = arith.constant 0 : index
    %c0_16 = arith.constant 0 : index
    %30 = vector.load %arg6[%c0_15, %c0_16] : memref<1x8xf32, #tpu.memory_space<vmem>>, vector<1x8xf32>
    %31 = vector.broadcast %30 : vector<1x8xf32> to vector<3x8xf32>
    %32 = arith.mulf %31, %29 : vector<3x8xf32>
    %c0_17 = arith.constant 0 : index
    %c0_18 = arith.constant 0 : index
    %33 = vector.load %arg7[%c0_17, %c0_18] : memref<1x8xf32, #tpu.memory_space<vmem>>, vector<1x8xf32>
    %34 = arith.mulf %28, %32 : vector<3x8xf32>
    %35 = vector.broadcast %33 : vector<1x8xf32> to vector<3x8xf32>
    %36 = arith.subf %35, %34 : vector<3x8xf32>
    %37 = tpu.concatenate %32, %36 in 1 : vector<3x8xf32>, vector<3x8xf32> -> vector<3x16xf32>
    %cst_19 = arith.constant 0.000000e+00 : f32
    %38 = vector.broadcast %cst_19 : f32 to vector<16x16xf32>
    %c0_i32 = arith.constant 0 : i32
    %39 = vector.broadcast %c0_i32 : i32 to vector<16x1xi32>
    %40 = arith.cmpi eq, %1, %39 : vector<16x1xi32>
    %41 = vector.extract_strided_slice %37 {offsets = [0, 0], sizes = [1, 16], strides = [1, 1]} : vector<3x16xf32> to vector<1x16xf32>
    %42 = vector.shape_cast %40 : vector<16x1xi1> to vector<16x1xi1>
    %43 = vector.broadcast %42 : vector<16x1xi1> to vector<16x16xi1>
    %44 = vector.shape_cast %41 : vector<1x16xf32> to vector<1x16xf32>
    %45 = vector.broadcast %44 : vector<1x16xf32> to vector<16x16xf32>
    %46 = arith.select %43, %45, %38 : vector<16x16xi1>, vector<16x16xf32>
    %c1_i32 = arith.constant 1 : i32
    %47 = vector.broadcast %c1_i32 : i32 to vector<16x1xi32>
    %48 = arith.cmpi eq, %1, %47 : vector<16x1xi32>
    %49 = vector.extract_strided_slice %37 {offsets = [1, 0], sizes = [1, 16], strides = [1, 1]} : vector<3x16xf32> to vector<1x16xf32>
    %50 = vector.shape_cast %48 : vector<16x1xi1> to vector<16x1xi1>
    %51 = vector.broadcast %50 : vector<16x1xi1> to vector<16x16xi1>
    %52 = vector.shape_cast %49 : vector<1x16xf32> to vector<1x16xf32>
    %53 = vector.broadcast %52 : vector<1x16xf32> to vector<16x16xf32>
    %54 = arith.select %51, %53, %46 : vector<16x16xi1>, vector<16x16xf32>
    %c2_i32 = arith.constant 2 : i32
    %55 = vector.broadcast %c2_i32 : i32 to vector<16x1xi32>
    %56 = arith.cmpi eq, %1, %55 : vector<16x1xi32>
    %57 = vector.extract_strided_slice %37 {offsets = [2, 0], sizes = [1, 16], strides = [1, 1]} : vector<3x16xf32> to vector<1x16xf32>
    %58 = vector.shape_cast %56 : vector<16x1xi1> to vector<16x1xi1>
    %59 = vector.broadcast %58 : vector<16x1xi1> to vector<16x16xi1>
    %60 = vector.shape_cast %57 : vector<1x16xf32> to vector<1x16xf32>
    %61 = vector.broadcast %60 : vector<1x16xf32> to vector<16x16xf32>
    %62 = arith.select %59, %61, %54 : vector<16x16xi1>, vector<16x16xf32>
    %63 = vector.extract_strided_slice %62 {offsets = [0, 0], sizes = [16, 8], strides = [1, 1]} : vector<16x16xf32> to vector<16x8xf32>
    %64 = arith.mulf %0, %63 : vector<16x8xf32>
    %65 = vector.extract_strided_slice %62 {offsets = [0, 8], sizes = [16, 8], strides = [1, 1]} : vector<16x16xf32> to vector<16x8xf32>
    %66 = arith.addf %64, %65 : vector<16x8xf32>
    %c0_20 = arith.constant 0 : index
    %c0_21 = arith.constant 0 : index
    %67 = vector.load %arg8[%c0_20, %c0_21] : memref<16x8xf32, #tpu.memory_space<vmem>>, vector<16x8xf32>
    tpu.vector_store %arg8[%c0_20, %c0_21], %66 {strides = array<i32>} : memref<16x8xf32, #tpu.memory_space<vmem>>, vector<16x8xf32>,
    return
  }
  func.func @transform_0(%arg0: i32) -> (i32, i32) {
    %c0_i32 = arith.constant 0 : i32
    %c0_i32_0 = arith.constant 0 : i32
    %c0_i32_1 = arith.constant 0 : i32
    return %c0_i32, %c0_i32_0 : i32, i32
  }
  func.func @transform_1(%arg0: i32) -> (i32, i32) {
    %c0_i32 = arith.constant 0 : i32
    %c0_i32_0 = arith.constant 0 : i32
    %c0_i32_1 = arith.constant 0 : i32
    return %c0_i32, %c0_i32_0 : i32, i32
  }
  func.func @transform_2(%arg0: i32) -> (i32, i32) {
    %c0_i32 = arith.constant 0 : i32
    %c0_i32_0 = arith.constant 0 : i32
    %c0_i32_1 = arith.constant 0 : i32
    return %c0_i32, %c0_i32_0 : i32, i32
  }
  func.func @transform_3(%arg0: i32) -> (i32, i32) {
    %c0_i32 = arith.constant 0 : i32
    %c0_i32_0 = arith.constant 0 : i32
    %c0_i32_1 = arith.constant 0 : i32
    return %c0_i32, %c0_i32_0 : i32, i32
  }
  func.func @transform_4(%arg0: i32) -> (i32, i32) {
    %c0_i32 = arith.constant 0 : i32
    %c0_i32_0 = arith.constant 0 : i32
    %c0_i32_1 = arith.constant 0 : i32
    return %c0_i32, %c0_i32_0 : i32, i32
  }
  func.func @transform_5(%arg0: i32) -> (i32, i32) {
    %c0_i32 = arith.constant 0 : i32
    %c0_i32_0 = arith.constant 0 : i32
    %c0_i32_1 = arith.constant 0 : i32
    return %c0_i32, %c0_i32_0 : i32, i32
  }
  func.func @transform_6(%arg0: i32) -> (i32, i32) {
    %c0_i32 = arith.constant 0 : i32
    %c0_i32_0 = arith.constant 0 : i32
    %c0_i32_1 = arith.constant 0 : i32
    return %c0_i32, %c0_i32_0 : i32, i32
  }
  func.func @transform_7(%arg0: i32) -> (i32, i32) {
    %c0_i32 = arith.constant 0 : i32
    %c0_i32_0 = arith.constant 0 : i32
    %c0_i32_1 = arith.constant 0 : i32
    return %c0_i32, %c0_i32_0 : i32, i32
  }
}

</mosaic_0001>

<bundles_post_ra>
// kernel: tpu_custom_call.1
= control target key start
LH: loop header
LB: loop body
LE: loop exit
PB: predicated region body
PF: predicated region fallthrough
CT: control target
= control target key end

     0   :  { %v636_v0 = vmov 0   ;;  %v637_v7 = vmov 0.0   ;;  %s638_s9 = smov 8   ;;  %v639_v9 = vmov 0.0|0.0   ;;  %vm640_vm0 = vmmov 0   ;;  %s641_s10 = smov 120   ;;  %s776_s1 = inlined_call_operand.vmem [shape: s32[16,1], index: 1, kind: input, shape index: {}]   ;;  %s777_s0 = inlined_call_operand.vmem [shape: f32[16,8], index: 0, kind: input, shape index: {}]   ;;  %s778_s3 = inlined_call_operand.vmem [shape: f32[8,4], index: 3, kind: input, shape index: {}]   ;;  %s779_s2 = inlined_call_operand.vmem [shape: f32[3,1], index: 2, kind: input, shape index: {}]   ;;  %s780_s4 = inlined_call_operand.vmem [shape: f32[4,8], index: 4, kind: input, shape index: {}]   ;;  %s781_s5 = inlined_call_operand.vmem [shape: f32[1,8], index: 5, kind: input, shape index: {}]   ;;  %s782_s6 = inlined_call_operand.vmem [shape: f32[1,8], index: 6, kind: input, shape index: {}]   ;;  %s783_s7 = inlined_call_operand.vmem [shape: f32[16,8], index: 7, kind: output, shape index: {}]  }
   0x1   :  { %628 = vset.pattern.permute.xlu0 %v636_v0  ;;  %v686_v1 = vld [vmem:[%s776_s1] sm:$0xff]  ;;  %v697_v3 = vld [vmem:[%s777_s0 + $0x8] sm:$0xff]  ;;  %599 = vmatprep.subr.mxu1 %v637_v7  ;;  %vm40_vm1 = vcmask 64512   ;;  %v43_v11 = vlaneseq  ;;  %vm89_vm4 = vcmask 130048   ;;  %vm329_vm11 = vcmask 1043456  }
   0x2   :  { %v691_v2 = vld [vmem:[%s777_s0] sm:$0xff]  ;;  %46 = vperm.xlu0 %628, %v686_v1   ;;  %v704_v5 = vld [vmem:[%s776_s1 + $0x8] sm:$0xff]  ;;  %v31_v6 = vmul.f32 %v697_v3, %v697_v3  ;;  %619 = vmatprep.subr.bf16.mxu0 %v639_v9  ;;  %vm498_vm5 = vcmp.eq.s32.totalorder %v686_v1, 0  ;;  %vm516_vm7 = vcmp.eq.s32.totalorder %v686_v1, 1  ;;  %vm534_vm9 = vcmp.eq.s32.totalorder %v686_v1, 2 }
   0x3   :  { %v30_v4 = vmul.f32 %v691_v2, %v691_v2  ;;  %596 = vmatprep.mubr.msk.f32.mxu0 %vm640_vm0, %v637_v7  ;;  %601 = vmatprep.mubr.msk.f32.mxu1 %vm640_vm0, %v637_v7  ;;  %v44_v17 = vand.u32 127, %v43_v11  ;;  %v164_v23 = vld [vmem:[%s778_s3] sm:$0xff]  ;;  %v500_v27 = vsel %vm498_vm5, 1, %v636_v0  ;;  %vm499_vm6 = vcmp.eq.s32.totalorder %v704_v5, 0 }
   0x4   :  { %600 = vmatpush3.msra.mxu1 %v164_v23  ;;  %v163_v26 = vld [vmem:[%s779_s2] sm:$0x7]  ;;  %v501_v28 = vsel %vm499_vm6, 1, %v636_v0  ;;  %v518_v29 = vsel %vm516_vm7, 1, %v636_v0  ;;  %vm517_vm8 = vcmp.eq.s32.totalorder %v704_v5, 1  ;;  %v536_v31 = vsel %vm534_vm9, 1, %v636_v0 }
   0x5   :  { %v629_v8 = vpack.i.bf16 %v31_v6, %v30_v4  ;;  %604 = vmatprep.subr.mxu1 %v637_v7  ;;  %v519_v30 = vsel %vm517_vm8, 1, %v636_v0  ;;  %vm535_vm10 = vcmp.eq.s32.totalorder %v704_v5, 2  ;;  %v165_v33 = vld [vmem:[%s780_s4] sm:$0xf]  ;;  %vm325_vm12 = vcmask 31744  }
   0x6   :  { %49 = vperm.xlu0 %628, %v704_v5   ;;  %v537_v32 = vsel %vm535_vm10, 1, %v636_v0  ;;  %v579_v49 = vld [vmem:[%s781_s5] ss:$0 sm:$0xff]  ;;  %v511_v61 = vshrl.u32 %v43_v11, 7 }
   0x7   :  { %630 = vrot.lane.b32.xlu1 %v629_v8, %s638_s9  ;;  %v580_v53 = vld [vmem:[%s782_s6] ss:$0 sm:$0xff] }
   0x8   :  { %v512_v63 = vsub.s32 0, %v511_v61  ;;  %v530_v0 = vsub.s32 1, %v511_v61  ;;  %v548_v1 = vsub.s32 2, %v511_v61 }
  0x79   :  { %v631_v10 = vpop.permute.xlu1 %630 }
  0x7a   :  { %v633_v12 = vunpack.i.h.bf16 %v631_v10  ;;  %v632_v13 = vunpack.i.l.bf16 %v631_v10 }
  0x7c   :  { %v41_v14 = vsel %vm40_vm1, %v691_v2, %v632_v13  ;;  %v42_v15 = vsel %vm40_vm1, %v697_v3, %v633_v12 }
  0x7d   :  { %v620_v16 = vpack.c.bf16 %v42_v15, %v41_v14 }
  0x7f   :  { %621 = vmatpush3.bf16.msra.mxu0 %v620_v16 }
  0x80   :  { %609 = vmatprep.subr.mxu0 %v637_v7 }
  0x81   :  { %v47_v18 = vpop.permute.xlu0 %46 }
  0x82   :  { %vm51_vm2 = vcmp.eq.s32.totalorder %v47_v18, %v44_v17 }
  0x83   :  { %v570_v19 = vsel %vm51_vm2, 1.0, %v637_v7 }
  0x84   :  { %57 = vxpose.xlu1.b32.start [1/2] (short) (narrow) %v570_v19, 8 }
  0x85   :  { %v50_v20 = vpop.permute.xlu0 %49 }
  0x86   :  { %vm52_vm3 = vcmp.eq.s32.totalorder %v50_v20, %v44_v17 }
  0x87   :  { %v571_v21 = vsel %vm52_vm3, 1.0, %v637_v7 }
  0x88   :  { %58 = vxpose.xlu1.b32.end [2/2] (short) (narrow) %v571_v21, 8 }
 0x104   :  { %v73_v22 = vpop.trf.xlu1 }
 0x105   :  { %597 = vmatmul.mubr.msk.f32.vlgmr.msra.gmra.mrb[0].mxu0 %vm89_vm4, %v73_v22 }
 0x106   :  { %611 = vmatprep.mubr.msk.f32.mxu0 %vm640_vm0, %v637_v7  ;;  %610 = vmatpush3.msk.msra.mxu0 %vm329_vm11, %v165_v33 }
 0x1d8   :  { %v159_v24 = vpop.f32.mrb[0].mxu0 }
 0x1d9   :  { %245 = vrot.lane.b32.xlu0 %v159_v24, %s641_s10  ;;  %v598_v25 = vpop.f32.mrb[1].mxu0  ;;  %602 = vmatmul.mubr.msk.f32.vlgmr.msra.gmra.mrb[0].mxu1 %vm40_vm1, %v159_v24 }
 0x1da   :  { %605 = vmatpush3.msra.mxu1 %v164_v23  ;;  %606 = vmatprep.mubr.msk.f32.mxu1 %vm640_vm0, %v637_v7 }
 0x1db   :  { %614 = vmatprep.subr.mxu1 %v637_v7 }
 0x1dd   :  { %241 = vperm.xlu0 %628, %v163_v26  }
 0x1e1   :  { %503 = vperm.xlu0 %628, %v500_v27  }
 0x1e5   :  { %506 = vperm.xlu0 %628, %v501_v28  }
 0x1e9   :  { %521 = vperm.xlu0 %628, %v518_v29  }
 0x1ed   :  { %524 = vperm.xlu0 %628, %v519_v30  }
 0x1f1   :  { %539 = vperm.xlu0 %628, %v536_v31  }
 0x1f5   :  { %542 = vperm.xlu0 %628, %v537_v32  }
 0x24b   :  { %v246_v34 = vpop.permute.xlu0 %245 }
 0x24c   :  { %607 = vmatmul.mubr.msk.f32.vlgmr.msra.gmra.mrb[2].mxu1 %vm40_vm1, %v246_v34 }
 0x24d   :  { %615 = vmatpush3.msk.msra.mxu1 %vm329_vm11, %v165_v33  ;;  %616 = vmatprep.mubr.msk.f32.mxu1 %vm640_vm0, %v637_v7 }
 0x25c   :  { %v242_v35 = vpop.permute.xlu0 %241 }
 0x260   :  { %v504_v56 = vpop.permute.xlu0 %503 }
 0x261   :  { %vm508_vm13 = vcmp.eq.s32.totalorder %v504_v56, 1 }
 0x264   :  { %v507_v57 = vpop.permute.xlu0 %506 }
 0x265   :  { %vm509_vm14 = vcmp.eq.s32.totalorder %v507_v57, 1 }
 0x268   :  { %v522_v58 = vpop.permute.xlu0 %521 }
 0x269   :  { %vm526_vm15 = vcmp.eq.s32.totalorder %v522_v58, 1 }
 0x26c   :  { %v525_v59 = vpop.permute.xlu0 %524 }
 0x26d   :  { %vm527_vm2 = vcmp.eq.s32.totalorder %v525_v59, 1 }
 0x270   :  { %v540_v60 = vpop.permute.xlu0 %539 }
 0x271   :  { %vm544_vm0 = vcmp.eq.s32.totalorder %v540_v60, 1 }
 0x274   :  { %v543_v62 = vpop.permute.xlu0 %542 }
 0x275   :  { %vm545_vm3 = vcmp.eq.s32.totalorder %v543_v62, 1 }
 0x2ac   :  { %v235_v36 = vpop.f32.mrb[0].mxu1 }
 0x2ad   :  { %v244_v37 = vmul.f32 %v242_v35, %v235_v36  ;;  %v603_v38 = vpop.f32.mrb[1].mxu1 }
 0x2af   :  { %612 = vmatmul.mubr.msk.f32.vlgmr.msra.gmra.mrb[2].mxu0 %vm325_vm12, %v244_v37  ;;  %v320_v40 = vmul.f32 %v244_v37, %v244_v37 }
 0x31f   :  { %v315_v39 = vpop.f32.mrb[2].mxu1 }
 0x320   :  { %v319_v41 = vmul.f32 %v315_v39, %v242_v35  ;;  %v608_v42 = vpop.f32.mrb[3].mxu1 }
 0x322   :  { %v321_v43 = vsub.f32 %v319_v41, %v320_v40 }
 0x324   :  { %v322_v44 = vmax.f32 %v321_v43, 0.0 }
 0x326   :  { %v323_v45 = vadd.f32 1e-05, %v322_v44 }
 0x328   :  { %634 = vrsqrt.f32 %v323_v45 }
 0x332   :  { %v635_v46 = vpop.eup %634 }
 0x333   :  { %617 = vmatmul.mubr.msk.f32.vlgmr.msra.gmra.mrb[4].mxu1 %vm325_vm12, %v635_v46 }
 0x382   :  { %v399_v47 = vpop.f32.mrb[2].mxu0 }
 0x383   :  { %v613_v48 = vpop.f32.mrb[3].mxu0 }
 0x406   :  { %v472_v50 = vpop.f32.mrb[4].mxu1 }
 0x407   :  { %v483_v51 = vmul.f32 %v579_v49, %v472_v50  ;;  %v618_v52 = vpop.f32.mrb[5].mxu1 }
 0x409   :  { %v485_v54 = vmul.f32 %v483_v51, %v399_v47 }
 0x40b   :  { %v492_v55 = vsub.f32 %v580_v53, %v485_v54 }
 0x40d   :  { %494 = vrot.lane.b32.xlu0 %v492_v55, %s638_s9 }
 0x47f   :  { %v495_v4 = vpop.permute.xlu0 %494 }
 0x480   :  { %v497_v5 = vsel %vm40_vm1, %v483_v51, %v495_v4 }
 0x481   :  { %v513_v6 = vrot.slane %v497_v5, %v512_v63  ;;  %v531_v7 = vrot.slane %v497_v5, %v530_v0  ;;  %v549_v10 = vrot.slane %v497_v5, %v548_v1 }
 0x483   :  { %v514_v8 = vsel %vm508_vm13, %v513_v6, 0.0  ;;  %v515_v9 = vsel %vm509_vm14, %v513_v6, 0.0 }
 0x484   :  { %v532_v12 = vsel %vm526_vm15, %v531_v7, %v514_v8  ;;  %v533_v11 = vsel %vm527_vm2, %v531_v7, %v515_v9 }
 0x485   :  { %v550_v13 = vsel %vm544_vm0, %v549_v10, %v532_v12  ;;  %v551_v14 = vsel %vm545_vm3, %v549_v10, %v533_v11 }
 0x486   :  { %556 = vrot.lane.b32.xlu0 %v550_v13, %s641_s10  ;;  %v552_v15 = vmul.f32 %v550_v13, %v691_v2  ;;  %v553_v18 = vmul.f32 %v551_v14, %v697_v3 }
 0x48a   :  { %558 = vrot.lane.b32.xlu0 %v551_v14, %s641_s10 }
 0x4f8   :  { %v557_v16 = vpop.permute.xlu0 %556 }
 0x4f9   :  { %v562_v17 = vadd.f32 %v557_v16, %v552_v15 }
 0x4fb   :  { %564 = vst.msk [vmem:[%s783_s7] sm:$0xff] %vm40_vm1, %v562_v17 }
 0x4fc   :  { %v559_v19 = vpop.permute.xlu0 %558 }
 0x4fd   :  { %v563_v20 = vadd.f32 %v559_v19, %v553_v18 }
 0x4ff   :  { %565 = vst.msk [vmem:[%s783_s7 + $0x8] sm:$0xff] %vm40_vm1, %v563_v20 }

</bundles_post_ra>
